<compile_context>
chip_gen: v6e
topology: v6e:2x2x1
jax: 0.10.0
libtpu: 0.0.40
codegen_flags: <defaults>
</compile_context>

<pallas_src>
import functools

import jax
import jax.numpy as jnp
from jax.experimental import pallas as pl
from jax.experimental.pallas import tpu as pltpu


def _round_up(x, m):
    return pl.cdiv(x, m) * m


def _mlp_kernel(x_ref, w1_ref, b1_ref, w2_ref, b2_ref, wh_ref, bh_ref, out_ref,
                *, outs, split_store):
    x = x_ref[...]

    # Layer 1: Linear + ReLU (low-precision operands on the MXU, f32
    # accumulation, f32 bias/ReLU epilogue).
    h1 = jnp.dot(x, w1_ref[...], preferred_element_type=jnp.float32) + b1_ref[...]
    h1 = jnp.maximum(h1, 0.0)

    # Layer 2: Linear + ReLU.
    h2 = jnp.dot(h1.astype(w2_ref.dtype), w2_ref[...],
                 preferred_element_type=jnp.float32) + b2_ref[...]
    h2 = jnp.maximum(h2, 0.0)

    # Fused mu|var head (single matmul over the concatenated, zero-padded head
    # weight).  Padding columns multiply by zero weights -> zero outputs.
    head = jnp.dot(h2.astype(wh_ref.dtype), wh_ref[...],
                   preferred_element_type=jnp.float32) + bh_ref[...]

    if split_store:
        # outs % 128 == 0: two lane-aligned, unmasked full-vreg stores and no
        # concat temp (vst is the scarcest bundle slot).
        out_ref[:, :outs] = h2.astype(out_ref.dtype)
        out_ref[:, outs:] = head.astype(out_ref.dtype)
    else:
        # Packed lane-dense slab: [h2 | mu | var | zero-pad].
        out_ref[...] = jnp.concatenate([h2, head], axis=-1).astype(out_ref.dtype)


def mlp_forward(x, params, *, block_b=512, compute_dtype=jnp.bfloat16,
                out_dtype=None):
    """x: [B, ins]. params: dict (see init_params). Returns (mlp, mu, var)."""
    if out_dtype is None:
        out_dtype = compute_dtype
    B, ins = x.shape
    outs = params["w1"].shape[1]
    latent = params["wmu"].shape[1]

    # ---- pack the mu/var heads into one weight and pad to lane-dense width.
    head_w = jnp.concatenate([params["wmu"], params["wv"]], axis=1)   # [outs, 2L]
    head_b = jnp.concatenate([params["bmu"], params["bv"]], axis=1)   # [1, 2L]
    total_w = outs + 2 * latent
    padded_w = _round_up(total_w, 128)        # lane-dense output slab width
    head_cols = padded_w - outs               # head slab width (>= 2L)
    pad_cols = head_cols - 2 * latent
    if pad_cols:
        head_w = jnp.pad(head_w, ((0, 0), (0, pad_cols)))
        head_b = jnp.pad(head_b, ((0, 0), (0, pad_cols)))

    # ---- low-precision matmul operands (bf16 default); accumulation and the
    # bias/ReLU epilogue stay f32 inside the kernel.
    x_c = x.astype(compute_dtype)
    w1 = params["w1"].astype(compute_dtype)
    w2 = params["w2"].astype(compute_dtype)
    head_w = head_w.astype(compute_dtype)
    b1 = params["b1"].astype(jnp.float32)
    b2 = params["b2"].astype(jnp.float32)
    head_b = head_b.astype(jnp.float32)

    # ---- batch tiling: TB rows per grid step, rounded to the dtype's sublane
    # packing multiple (8 for f32, 16 for bf16, 32 for int8/fp8).
    itemsize = jnp.dtype(compute_dtype).itemsize
    sub = {4: 8, 2: 16, 1: 32}.get(itemsize, 8)
    tb = min(block_b, _round_up(B, sub))
    tb = _round_up(tb, sub)
    # v7x megacore: prefer >=2 grid steps (when the batch allows) so the
    # "parallel" batch axis can shard across both TensorCores.
    if _round_up(B, tb) // tb < 2 and B > sub:
        tb = _round_up(pl.cdiv(_round_up(B, sub), 2), sub)
    b_pad = _round_up(B, tb)
    if b_pad != B:
        x_c = jnp.pad(x_c, ((0, b_pad - B), (0, 0)))
    num_blocks = b_pad // tb

    # Whole-array, VMEM-resident operands: constant block index (never
    # re-DMA'd across grid steps) + single-buffered -> half the resident
    # weight footprint (matters most on v7x's 64 MiB VMEM).
    def resident(arr):
        return pl.BlockSpec(arr.shape, lambda i: (0, 0),
                            pipeline_mode=pl.Buffered(1))

    out_itemsize = jnp.dtype(out_dtype).itemsize
    weight_bytes = (w1.size + w2.size + head_w.size) * itemsize
    bias_bytes = (b1.size + b2.size + head_b.size) * 4
    # 2x double-buffered x / out tiles + f32 intermediates + resident weights.
    buf_bytes = (2 * tb * ins * itemsize
                 + 2 * tb * padded_w * out_itemsize
                 + tb * (2 * outs + head_cols) * 4
                 + weight_bytes + bias_bytes)
    vmem_limit = int(min(64 << 20, max(int(1.5 * buf_bytes), 16 << 20)))

    flops = 2 * b_pad * (ins * outs + outs * outs + outs * head_cols)
    bytes_accessed = (x_c.size * itemsize + weight_bytes + bias_bytes
                      + b_pad * padded_w * out_itemsize)

    kernel = functools.partial(_mlp_kernel, outs=outs,
                               split_store=(outs % 128 == 0))

    out = pl.pallas_call(
        kernel,
        out_shape=jax.ShapeDtypeStruct((b_pad, padded_w), out_dtype),
        grid_spec=pltpu.PrefetchScalarGridSpec(
            num_scalar_prefetch=0,
            grid=(num_blocks,),
            in_specs=[
                # x tiles: default double-buffering (raise to pl.Buffered(3)
                # only if profiling shows exposed x-tile DMA at large TB).
                pl.BlockSpec((tb, ins), lambda i: (i, 0)),
                resident(w1), resident(b1),
                resident(w2), resident(b2),
                resident(head_w), resident(head_b),
            ],
            out_specs=pl.BlockSpec((tb, padded_w), lambda i: (i, 0)),
        ),
        compiler_params=pltpu.CompilerParams(
            dimension_semantics=("parallel",),
            vmem_limit_bytes=vmem_limit,
        ),
        cost_estimate=pl.CostEstimate(
            flops=flops, transcendentals=0, bytes_accessed=bytes_accessed),
    )(x_c, w1, b1, w2, b2, head_w, head_b)

    mlp = out[:B, :outs]
    mu = out[:B, outs:outs + latent]
    var = out[:B, outs + latent:outs + 2 * latent]
    # NOTE: "var" is a raw linear head (can be negative), matching the PyTorch
    # module; any exp/softplus is applied by downstream code, not here.
    return mlp, mu, var


def init_params(key, ins, outs, latent):
    """Deterministic synthetic parameters (Kaiming-uniform-ish scaling)."""
    ks = jax.random.split(key, 8)

    def lin(kw, kb, fan_in, fan_out):
        bound = 1.0 / jnp.sqrt(fan_in)
        w = jax.random.uniform(kw, (fan_in, fan_out), jnp.float32, -bound, bound)
        b = jax.random.uniform(kb, (1, fan_out), jnp.float32, -bound, bound)
        return w, b

    w1, b1 = lin(ks[0], ks[1], ins, outs)
    w2, b2 = lin(ks[2], ks[3], outs, outs)
    wmu, bmu = lin(ks[4], ks[5], outs, latent)
    wv, bv = lin(ks[6], ks[7], outs, latent)
    return dict(w1=w1, b1=b1, w2=w2, b2=b2, wmu=wmu, bmu=bmu, wv=wv, bv=bv)


def mlp_reference(x, p):
    """Pure-JAX reference for correctness check."""
    h1 = jnp.maximum(x @ p["w1"] + p["b1"], 0.0)
    h2 = jnp.maximum(h1 @ p["w2"] + p["b2"], 0.0)
    return h2, h2 @ p["wmu"] + p["bmu"], h2 @ p["wv"] + p["bv"]


if __name__ == "__main__":
    B, INS, OUTS, LATENT = 8, 32, 64, 16

    key = jax.random.PRNGKey(0)
    kx, kp = jax.random.split(key)
    x = jax.random.normal(kx, (B, INS), jnp.float32)
    params = init_params(kp, INS, OUTS, LATENT)
    ref_mlp, ref_mu, ref_var = mlp_reference(x, params)

    # 1) f32 compute path: tight correctness check vs the pure-JAX reference.
    mlp32, mu32, var32 = mlp_forward(x, params, compute_dtype=jnp.float32,
                                     out_dtype=jnp.float32)
    jax.block_until_ready((mlp32, mu32, var32))
    assert mlp32.shape == ref_mlp.shape
    assert mu32.shape == ref_mu.shape
    assert var32.shape == ref_var.shape
    assert jnp.allclose(mlp32, ref_mlp, atol=1e-5, rtol=1e-5)
    assert jnp.allclose(mu32, ref_mu, atol=1e-5, rtol=1e-5)
    assert jnp.allclose(var32, ref_var, atol=1e-5, rtol=1e-5)

    # 2) Default throughput path (bf16 operands + bf16 output slab, f32
    # accumulation): looser tolerance for expected bf16 rounding.
    mlp_bf, mu_bf, var_bf = mlp_forward(x, params)
    jax.block_until_ready((mlp_bf, mu_bf, var_bf))
    assert mlp_bf.dtype == jnp.bfloat16
    assert jnp.allclose(mlp_bf.astype(jnp.float32), ref_mlp, atol=5e-2, rtol=5e-2)
    assert jnp.allclose(mu_bf.astype(jnp.float32), ref_mu, atol=5e-2, rtol=5e-2)
    assert jnp.allclose(var_bf.astype(jnp.float32), ref_var, atol=5e-2, rtol=5e-2)

    print("KERNEL_OK")
</pallas_src>

<mosaic_0001>
module attributes {stable_mosaic.version = 11 : i64} {
  func.func @_mlp_kernel(%arg0: i32, %arg1: memref<8x32xf32, #tpu.memory_space<vmem>>, %arg2: memref<32x64xf32, #tpu.memory_space<vmem>>, %arg3: memref<1x64xf32, #tpu.memory_space<vmem>>, %arg4: memref<64x64xf32, #tpu.memory_space<vmem>>, %arg5: memref<1x64xf32, #tpu.memory_space<vmem>>, %arg6: memref<64x64xf32, #tpu.memory_space<vmem>>, %arg7: memref<1x64xf32, #tpu.memory_space<vmem>>, %arg8: memref<8x128xf32, #tpu.memory_space<vmem>>) attributes {dimension_semantics = [#tpu.dimension_semantics<parallel>], iteration_bounds = array<i64: 1>, scalar_prefetch = 0 : i64, scratch_operands = 0 : i64, tpu.core_type = #tpu.core_type<tc>, window_params = [{transform_indices = @transform_0, window_bounds = array<i64: 8, 32>}, {pipeline_mode = #tpu.pipeline_mode<synchronous>, transform_indices = @transform_1, window_bounds = array<i64: 32, 64>}, {pipeline_mode = #tpu.pipeline_mode<synchronous>, transform_indices = @transform_2, window_bounds = array<i64: 1, 64>}, {pipeline_mode = #tpu.pipeline_mode<synchronous>, transform_indices = @transform_3, window_bounds = array<i64: 64, 64>}, {pipeline_mode = #tpu.pipeline_mode<synchronous>, transform_indices = @transform_4, window_bounds = array<i64: 1, 64>}, {pipeline_mode = #tpu.pipeline_mode<synchronous>, transform_indices = @transform_5, window_bounds = array<i64: 64, 64>}, {pipeline_mode = #tpu.pipeline_mode<synchronous>, transform_indices = @transform_6, window_bounds = array<i64: 1, 64>}, {transform_indices = @transform_7, window_bounds = array<i64: 8, 128>}]} {
    %c0 = arith.constant 0 : index
    %c0_0 = arith.constant 0 : index
    %0 = vector.load %arg1[%c0, %c0_0] : memref<8x32xf32, #tpu.memory_space<vmem>>, vector<8x32xf32>
    %c0_1 = arith.constant 0 : index
    %c0_2 = arith.constant 0 : index
    %1 = vector.load %arg2[%c0_1, %c0_2] : memref<32x64xf32, #tpu.memory_space<vmem>>, vector<32x64xf32>
    %cst = arith.constant dense<0.000000e+00> : vector<8x64xf32>
    %2 = tpu.matmul %0, %1, %cst {dimension_numbers = #tpu.dot_dimension_numbers<[1], [0], [0], [1], [0, 0, 1, 1], [], []>} : vector<8x32xf32>, vector<32x64xf32>, vector<8x64xf32> -> vector<8x64xf32>
    %c0_3 = arith.constant 0 : index
    %c0_4 = arith.constant 0 : index
    %3 = vector.load %arg3[%c0_3, %c0_4] : memref<1x64xf32, #tpu.memory_space<vmem>>, vector<1x64xf32>
    %4 = vector.broadcast %3 : vector<1x64xf32> to vector<8x64xf32>
    %5 = arith.addf %2, %4 : vector<8x64xf32>
    %cst_5 = arith.constant 0.000000e+00 : f32
    %6 = vector.broadcast %cst_5 : f32 to vector<8x64xf32>
    %7 = arith.maximumf %5, %6 : vector<8x64xf32>
    %c0_6 = arith.constant 0 : index
    %c0_7 = arith.constant 0 : index
    %8 = vector.load %arg4[%c0_6, %c0_7] : memref<64x64xf32, #tpu.memory_space<vmem>>, vector<64x64xf32>
    %cst_8 = arith.constant dense<0.000000e+00> : vector<8x64xf32>
    %9 = tpu.matmul %7, %8, %cst_8 {dimension_numbers = #tpu.dot_dimension_numbers<[1], [0], [0], [1], [0, 0, 1, 1], [], []>} : vector<8x64xf32>, vector<64x64xf32>, vector<8x64xf32> -> vector<8x64xf32>
    %c0_9 = arith.constant 0 : index
    %c0_10 = arith.constant 0 : index
    %10 = vector.load %arg5[%c0_9, %c0_10] : memref<1x64xf32, #tpu.memory_space<vmem>>, vector<1x64xf32>
    %11 = vector.broadcast %10 : vector<1x64xf32> to vector<8x64xf32>
    %12 = arith.addf %9, %11 : vector<8x64xf32>
    %cst_11 = arith.constant 0.000000e+00 : f32
    %13 = vector.broadcast %cst_11 : f32 to vector<8x64xf32>
    %14 = arith.maximumf %12, %13 : vector<8x64xf32>
    %c0_12 = arith.constant 0 : index
    %c0_13 = arith.constant 0 : index
    %15 = vector.load %arg6[%c0_12, %c0_13] : memref<64x64xf32, #tpu.memory_space<vmem>>, vector<64x64xf32>
    %cst_14 = arith.constant dense<0.000000e+00> : vector<8x64xf32>
    %16 = tpu.matmul %14, %15, %cst_14 {dimension_numbers = #tpu.dot_dimension_numbers<[1], [0], [0], [1], [0, 0, 1, 1], [], []>} : vector<8x64xf32>, vector<64x64xf32>, vector<8x64xf32> -> vector<8x64xf32>
    %c0_15 = arith.constant 0 : index
    %c0_16 = arith.constant 0 : index
    %17 = vector.load %arg7[%c0_15, %c0_16] : memref<1x64xf32, #tpu.memory_space<vmem>>, vector<1x64xf32>
    %18 = vector.broadcast %17 : vector<1x64xf32> to vector<8x64xf32>
    %19 = arith.addf %16, %18 : vector<8x64xf32>
    %20 = tpu.concatenate %14, %19 in 1 : vector<8x64xf32>, vector<8x64xf32> -> vector<8x128xf32>
    %c0_17 = arith.constant 0 : index
    %c0_18 = arith.constant 0 : index
    %21 = vector.load %arg8[%c0_17, %c0_18] : memref<8x128xf32, #tpu.memory_space<vmem>>, vector<8x128xf32>
    tpu.vector_store %arg8[%c0_17, %c0_18], %20 {strides = array<i32>} : memref<8x128xf32, #tpu.memory_space<vmem>>, vector<8x128xf32>,
    return
  }
  func.func @transform_0(%arg0: i32) -> (i32, i32) {
    %c0_i32 = arith.constant 0 : i32
    %c0_i32_0 = arith.constant 0 : i32
    return %arg0, %c0_i32 : i32, i32
  }
  func.func @transform_1(%arg0: i32) -> (i32, i32) {
    %c0_i32 = arith.constant 0 : i32
    %c0_i32_0 = arith.constant 0 : i32
    %c0_i32_1 = arith.constant 0 : i32
    return %c0_i32, %c0_i32_0 : i32, i32
  }
  func.func @transform_2(%arg0: i32) -> (i32, i32) {
    %c0_i32 = arith.constant 0 : i32
    %c0_i32_0 = arith.constant 0 : i32
    %c0_i32_1 = arith.constant 0 : i32
    return %c0_i32, %c0_i32_0 : i32, i32
  }
  func.func @transform_3(%arg0: i32) -> (i32, i32) {
    %c0_i32 = arith.constant 0 : i32
    %c0_i32_0 = arith.constant 0 : i32
    %c0_i32_1 = arith.constant 0 : i32
    return %c0_i32, %c0_i32_0 : i32, i32
  }
  func.func @transform_4(%arg0: i32) -> (i32, i32) {
    %c0_i32 = arith.constant 0 : i32
    %c0_i32_0 = arith.constant 0 : i32
    %c0_i32_1 = arith.constant 0 : i32
    return %c0_i32, %c0_i32_0 : i32, i32
  }
  func.func @transform_5(%arg0: i32) -> (i32, i32) {
    %c0_i32 = arith.constant 0 : i32
    %c0_i32_0 = arith.constant 0 : i32
    %c0_i32_1 = arith.constant 0 : i32
    return %c0_i32, %c0_i32_0 : i32, i32
  }
  func.func @transform_6(%arg0: i32) -> (i32, i32) {
    %c0_i32 = arith.constant 0 : i32
    %c0_i32_0 = arith.constant 0 : i32
    %c0_i32_1 = arith.constant 0 : i32
    return %c0_i32, %c0_i32_0 : i32, i32
  }
  func.func @transform_7(%arg0: i32) -> (i32, i32) {
    %c0_i32 = arith.constant 0 : i32
    %c0_i32_0 = arith.constant 0 : i32
    return %arg0, %c0_i32 : i32, i32
  }
}

</mosaic_0001>

<bundles_post_ra>
// kernel: tpu_custom_call.1
= control target key start
LH: loop header
LB: loop body
LE: loop exit
PB: predicated region body
PF: predicated region fallthrough
CT: control target
= control target key end

     0   :  { %12 = vsyncpa [#allocation3], 0  ;;  %s676_s0 = inlined_call_operand.hbm [shape: f32[8,32], index: 0, kind: input, shape index: {}]   ;;  %s677_s1 = inlined_call_operand.hbm [shape: f32[32,64], index: 1, kind: input, shape index: {}]   ;;  %s678_s2 = inlined_call_operand.vmem [shape: f32[1,64], index: 2, kind: input, shape index: {}]   ;;  %s679_s3 = inlined_call_operand.hbm [shape: f32[64,64], index: 3, kind: input, shape index: {}]   ;;  %s680_s4 = inlined_call_operand.vmem [shape: f32[1,64], index: 4, kind: input, shape index: {}]   ;;  %s681_s5 = inlined_call_operand.hbm [shape: f32[64,64], index: 5, kind: input, shape index: {}]   ;;  %s682_s6 = inlined_call_operand.vmem [shape: f32[1,64], index: 6, kind: input, shape index: {}]   ;;  %s683_s7 = inlined_call_operand.hbm [shape: f32[8,128], index: 7, kind: output, shape index: {}]  }
   0x1   :  { %13 = vsyncpa [#allocation6], 0 }
   0x2   :  { %14 = vsyncpa [#allocation9], 0 }
   0x3   :  { %15 = vsyncpa [#allocation4], 0  ;;  %s564_s24 = smov [#allocation5]  }
   0x4   :  { %s31_s25 = sshll.u32 %s564_s24, 4  ;;  %s32_s25 = int_to_ptr.vmem [resolvable:$true] %s31_s25 }
   0x5   :  { %s464_s26 = scalar_lea.vmem %s32_s25, 512  ;;  %p469_p1 = scmp.lt.s32.totalorder %s32_s25, %s32_s25 }
   0x6   :  { %p465_p0 = scmp.ne.s32.totalorder %s32_s25, %s464_s26  ;;  %p470_p2 = scmp.lt.s32.totalorder %s464_s26, %s464_s26 }
   0x8   :  { %p471_p3 = por %p470_p2, %p469_p1 }
   0xa   :  { %p472_p4 = pnand %p471_p3, %p465_p0 }
   0xc   :  { %475 = shalt.err (!%p472_p4)
}
   0xd   :  { %s565_s27 = smov 128   ;;  %s566_s28 = smov 8  }
   0xe   :  { %37 = dma.hbm_to_vmem [thread:$0]  %s677_s1, 512, %s32_s25, [#allocation6], %s565_s27, %s565_s27, %s566_s28  }
   0xf   :  { %s567_s8 = smov [#allocation2]   ;;  %s568_s10 = smov [#allocation7]  }
  0x10   :  { %s22_s9 = sshll.u32 %s567_s8, 4  ;;  %s45_s11 = sshll.u32 %s568_s10, 4  ;;  %s23_s9 = int_to_ptr.vmem [resolvable:$true] %s22_s9  ;;  %s46_s11 = int_to_ptr.vmem [resolvable:$true] %s45_s11 }
  0x11   :  { %s484_s12 = scalar_lea.vmem %s23_s9, 128  ;;  %p489_p6 = scmp.lt.s32.totalorder %s23_s9, %s23_s9 }
  0x12   :  { %p485_p5 = scmp.ne.s32.totalorder %s23_s9, %s484_s12  ;;  %p490_p7 = scmp.lt.s32.totalorder %s484_s12, %s484_s12 }
  0x14   :  { %p491_p8 = por %p490_p7, %p489_p6 }
  0x16   :  { %p492_p9 = pnand %p491_p8, %p485_p5 }
  0x18   :  { %495 = shalt.err (!%p492_p9)
}
  0x19   :  { %25 = dma.hbm_to_vmem [thread:$0]  %s676_s0, 128, %s23_s9, [#allocation3]  }
  0x1a   :  { %s504_s15 = scalar_lea.vmem %s46_s11, 1024  ;;  %p509_p11 = scmp.lt.s32.totalorder %s46_s11, %s46_s11 }
  0x1b   :  { %p505_p10 = scmp.ne.s32.totalorder %s46_s11, %s504_s15  ;;  %p510_p12 = scmp.lt.s32.totalorder %s504_s15, %s504_s15 }
  0x1d   :  { %p511_p13 = por %p510_p12, %p509_p11 }
  0x1f   :  { %p512_p0 = pnand %p511_p13, %p505_p10 }
  0x21   :  { %515 = shalt.err (!%p512_p0)
}
  0x22   :  { %51 = dma.hbm_to_vmem [thread:$0]  %s679_s3, 1024, %s46_s11, [#allocation6], %s565_s27, %s565_s27, %s566_s28  }
  0x23   :  { %s569_s17 = smov [#allocation8]  }
  0x24   :  { %s59_s18 = sshll.u32 %s569_s17, 4  ;;  %s60_s18 = int_to_ptr.vmem [resolvable:$true] %s59_s18 }
  0x25   :  { %s524_s19 = scalar_lea.vmem %s60_s18, 1024  ;;  %p529_p2 = scmp.lt.s32.totalorder %s60_s18, %s60_s18 }
  0x26   :  { %p525_p1 = scmp.ne.s32.totalorder %s60_s18, %s524_s19  ;;  %p530_p3 = scmp.lt.s32.totalorder %s524_s19, %s524_s19 }
  0x28   :  { %p531_p4 = por %p530_p3, %p529_p2 }
  0x2a   :  { %p532_p5 = pnand %p531_p4, %p525_p1 }
  0x2c   :  { %535 = shalt.err (!%p532_p5)
}
  0x2d   :  { %65 = dma.hbm_to_vmem [thread:$0]  %s681_s5, 1024, %s60_s18, [#allocation9], %s565_s27, %s565_s27, %s566_s28  }
  0x2e   :  { %556 = dma.done.wait [#allocation3], 128  }
  0x2f   :  { %557 = vsyncadd [#allocation3], 4294967168 }
  0x30   :  { %558 = dma.done.wait [#allocation6], 1536  }
  0x31   :  { %559 = vsyncadd [#allocation6], 4294965760 }
  0x32   :  { %560 = dma.done.wait [#allocation9], 1024  }
  0x33   :  { %561 = vsyncadd [#allocation9], 4294966272  ;;  %v570_v0 = vmov 0.0   ;;  %vm571_vm0 = vmmov 0   ;;  %v84_v1 = vld [vmem:[#allocation5 + $0x18] sm:$0xff]  ;;  %v83_v2 = vld [vmem:[#allocation5 + $0x10] sm:$0xff] }
  0x34   :  { %397 = vmatprep.subr.mxu0 %v570_v0  ;;  %405 = vmatprep.mubr.msk.f32.mxu0 %vm571_vm0, %v570_v0  ;;  %v174_v3 = vld [vmem:[#allocation7 + $0x38] sm:$0xff]  ;;  %v82_v4 = vld [vmem:[#allocation5 + $0x8] sm:$0xff]  ;;  %v173_v5 = vld [vmem:[#allocation7 + $0x30] sm:$0xff]  ;;  %vm92_vm1 = vcmask 261120   ;;  %vm182_vm2 = vcmask 523264   ;;  %s572_s24 = smov 64  }
  0x35   :  { %408 = vmatprep.subr.mxu1 %v570_v0  ;;  %424 = vmatprep.mubr.msk.f32.mxu1 %vm571_vm0, %v570_v0  ;;  %v172_v6 = vld [vmem:[#allocation7 + $0x28] sm:$0xff]  ;;  %v81_v7 = vld [vmem:[#allocation5] sm:$0xff]  ;;  %v80_v8 = vld [vmem:[#allocation2] sm:$0xff]  ;;  %s573_s25 = smov [#allocation10]  }
  0x36   :  { %398 = vmatpush3.msra.mxu0 %v84_v1  ;;  %409 = vmatpush3.msra.mxu1 %v174_v3  ;;  %v171_v9 = vld [vmem:[#allocation7 + $0x20] sm:$0xff]  ;;  %v170_v10 = vld [vmem:[#allocation7 + $0x18] sm:$0xff]  ;;  %v169_v11 = vld [vmem:[#allocation7 + $0x10] sm:$0xff]  ;;  %s357_s26 = sshll.u32 %s573_s25, 4  ;;  %s358_s26 = int_to_ptr.vmem [resolvable:$true] %s357_s26 }
  0x37   :  { %399 = vmatprep.subr.mxu0 %v570_v0  ;;  %410 = vmatprep.subr.mxu1 %v570_v0  ;;  %v168_v12 = vld [vmem:[#allocation7 + $0x8] sm:$0xff]  ;;  %v167_v13 = vld [vmem:[#allocation7] sm:$0xff]  ;;  %v264_v14 = vld [vmem:[#allocation8 + $0x38] sm:$0xff]  ;;  %p541_p7 = scmp.lt.s32.totalorder %s358_s26, %s358_s26 }
  0x38   :  { %400 = vmatpush3.msra.mxu0 %v83_v2  ;;  %411 = vmatpush3.msra.mxu1 %v173_v5  ;;  %v263_v15 = vld [vmem:[#allocation8 + $0x30] sm:$0xff]  ;;  %v262_v16 = vld [vmem:[#allocation8 + $0x28] sm:$0xff]  ;;  %v261_v17 = vld [vmem:[#allocation8 + $0x20] sm:$0xff] }
  0x39   :  { %401 = vmatprep.subr.mxu0 %v570_v0  ;;  %412 = vmatprep.subr.mxu1 %v570_v0  ;;  %v260_v18 = vld [vmem:[#allocation8 + $0x18] sm:$0xff]  ;;  %v259_v24 = vld [vmem:[#allocation8 + $0x10] sm:$0xff]  ;;  %v258_v25 = vld [vmem:[#allocation8 + $0x8] sm:$0xff] }
  0x3a   :  { %402 = vmatpush3.msra.mxu0 %v82_v4  ;;  %413 = vmatpush3.msra.mxu1 %v172_v6  ;;  %v368_v19 = vld [vmem:[%s678_s2] ss:$0 sm:$0xff]  ;;  %v257_v26 = vld [vmem:[#allocation8] sm:$0xff] }
  0x3b   :  { %403 = vmatprep.subr.mxu0 %v570_v0  ;;  %414 = vmatprep.subr.mxu1 %v570_v0  ;;  %v370_v27 = vld [vmem:[%s680_s4] ss:$0 sm:$0xff]  ;;  %s536_s4 = scalar_lea.vmem %s358_s26, 128 }
  0x3c   :  { %404 = vmatpush3.msra.mxu0 %v81_v7  ;;  %415 = vmatpush3.msra.mxu1 %v171_v9  ;;  %v372_v32 = vld [vmem:[%s682_s6] ss:$0 sm:$0xff]  ;;  %p537_p6 = scmp.ne.s32.totalorder %s358_s26, %s536_s4  ;;  %p542_p8 = scmp.lt.s32.totalorder %s536_s4, %s536_s4 }
  0x3d   :  { %406 = vmatmul.mubr.msk.f32.vlgmr.msra.gmra.mxu0 %vm92_vm1, %v80_v8  ;;  %416 = vmatprep.subr.mxu1 %v570_v0 }
  0x3e   :  { %427 = vmatprep.subr.mxu0 %v570_v0  ;;  %417 = vmatpush3.msra.mxu1 %v170_v10  ;;  %p543_p9 = por %p542_p8, %p541_p7 }
  0x3f   :  { %443 = vmatprep.mubr.msk.f32.mxu0 %vm571_vm0, %v570_v0  ;;  %418 = vmatprep.subr.mxu1 %v570_v0 }
  0x40   :  { %419 = vmatpush3.msra.mxu1 %v169_v11  ;;  %428 = vmatpush3.msra.mxu0 %v264_v14  ;;  %p544_p10 = pnand %p543_p9, %p537_p6 }
  0x41   :  { %420 = vmatprep.subr.mxu1 %v570_v0  ;;  %429 = vmatprep.subr.mxu0 %v570_v0 }
  0x42   :  { %421 = vmatpush3.msra.mxu1 %v168_v12  ;;  %430 = vmatpush3.msra.mxu0 %v263_v15 }
  0x43   :  { %422 = vmatprep.subr.mxu1 %v570_v0  ;;  %431 = vmatprep.subr.mxu0 %v570_v0 }
  0x44   :  { %423 = vmatpush3.msra.mxu1 %v167_v13  ;;  %432 = vmatpush3.msra.mxu0 %v262_v16 }
  0x45   :  { %433 = vmatprep.subr.mxu0 %v570_v0 }
  0x46   :  { %434 = vmatpush3.msra.mxu0 %v261_v17 }
  0x47   :  { %435 = vmatprep.subr.mxu0 %v570_v0 }
  0x48   :  { %436 = vmatpush3.msra.mxu0 %v260_v18 }
  0x49   :  { %437 = vmatprep.subr.mxu0 %v570_v0 }
  0x4a   :  { %438 = vmatpush3.msra.mxu0 %v259_v24 }
  0x4b   :  { %439 = vmatprep.subr.mxu0 %v570_v0 }
  0x4c   :  { %440 = vmatpush3.msra.mxu0 %v258_v25 }
  0x4d   :  { %441 = vmatprep.subr.mxu0 %v570_v0 }
  0x4e   :  { %442 = vmatpush3.msra.mxu0 %v257_v26 }
  0xfd   :  { %v162_v20 = vpop.f32.mrf.mxu0 }
  0xfe   :  { %v163_v21 = vadd.f32 %v368_v19, %v162_v20 }
  0xff   :  { %v407_v22 = vpop.f32.mrf.mxu0 }
 0x100   :  { %v166_v23 = vmax.f32 %v163_v21, 0.0 }
 0x102   :  { %425 = vmatmul.mubr.msk.f32.vlgmr.msra.gmra.mxu1 %vm182_vm2, %v166_v23 }
 0x1c2   :  { %v252_v28 = vpop.f32.mrf.mxu1 }
 0x1c3   :  { %v253_v29 = vadd.f32 %v370_v27, %v252_v28 }
 0x1c4   :  { %v426_v30 = vpop.f32.mrf.mxu1 }
 0x1c5   :  { %v256_v31 = vmax.f32 %v253_v29, 0.0 }
 0x1c7   :  { %444 = vmatmul.mubr.msk.f32.vlgmr.msra.gmra.mxu0 %vm182_vm2, %v256_v31 }
 0x287   :  { %v341_v33 = vpop.f32.mrf.mxu0 }
 0x288   :  { %v342_v34 = vadd.f32 %v372_v32, %v341_v33 }
 0x289   :  { %v445_v35 = vpop.f32.mrf.mxu0 }
 0x28a   :  { %346 = vrot.lane.b32.xlu0 %v342_v34, %s572_s24 }
 0x2fc   :  { %v347_v36 = vpop.permute.xlu0 %346 }
 0x2fd   :  { %v349_v37 = vsel %vm182_vm2, %v256_v31, %v347_v36 }
 0x2fe   :  { %350 = vst [vmem:[#allocation10] sm:$0xff] %v349_v37 }
 0x2ff   :  { %547 = shalt.err (!%p544_p10)
}
 0x300   :  { %360 = dma.vmem_to_hbm [thread:$0]  %s358_s26, 128, %s683_s7, [#allocation4]  }
 0x301   :  { %562 = dma.done.wait [#allocation4], 128  }
 0x302   :  { %563 = vsyncadd [#allocation4], 4294967168 }
 0x303   :  { %364 = vsyncpa [#allocation3], 1 }
 0x304   :  { %365 = vsyncpa [#allocation6], 1 }
 0x305   :  { %366 = vsyncpa [#allocation9], 1 }
 0x306   :  { %367 = vsyncpa [#allocation4], 1 }

</bundles_post_ra>
